<compile_context>
chip_gen: v7x
topology: tpu7x:2x2x1
jax: 0.10.0
libtpu: 0.0.40
codegen_flags: <defaults>
</compile_context>

<pallas_src>
import functools

import jax
import jax.numpy as jnp
from jax.experimental import pallas as pl
from jax.experimental.pallas import tpu as pltpu


# ----------------------------------------------------------------------------
# Kernels
# ----------------------------------------------------------------------------
def _se_fused_kernel(x_ref, w1t_ref, b1_ref, w2t_ref, b2_ref, o_ref, *, inv_hw):
    """Single-pass SE block on a (Bt, C, HW) block."""
    # Squeeze: f32-accumulated global average pool over HW (no f32 block copy).
    pooled = jnp.sum(x_ref[...], axis=2, dtype=jnp.float32) * inv_hw        # (Bt, C)

    # Excite: FC -> ReLU -> FC -> Sigmoid on the MXU (f32 accumulation).
    hidden = jnp.dot(pooled, w1t_ref[...],
                     preferred_element_type=jnp.float32) + b1_ref[...]      # (Bt, Cr)
    hidden = jnp.maximum(hidden, 0.0)
    logits = jnp.dot(hidden, w2t_ref[...],
                     preferred_element_type=jnp.float32) + b2_ref[...]      # (Bt, C)
    # out = x*s + x == x*(s+1): fold the residual into the scale.
    scale = (jax.nn.sigmoid(logits) + 1.0).astype(x_ref.dtype)              # (Bt, C)

    # Scale + residual in the input dtype (bf16 VALU on v6e/v7x).
    o_ref[...] = (x_ref[...] * scale[:, :, None]).astype(o_ref.dtype)


def _se_pool_excite_kernel(x_ref, w1_ref, b1_ref, w2_ref, b2_ref, scale_ref,
                           acc_ref, *, inv_hw):
    """HW-chunked squeeze + excite: accumulate the per-channel sum over HW
    chunks; compute the (residual-folded) scale on the last chunk."""
    hw = pl.program_id(1)

    @pl.when(hw == 0)
    def _():
        acc_ref[...] = jnp.zeros_like(acc_ref)

    # x block is (1, C, thw); reduce the lane (HW) axis with f32 accumulation.
    acc_ref[...] += jnp.sum(x_ref[0], axis=1, keepdims=True,
                            dtype=jnp.float32)                               # (C, 1)

    @pl.when(hw == pl.num_programs(1) - 1)
    def _():
        pooled = acc_ref[...] * inv_hw                                       # (C, 1)
        hidden = jnp.dot(w1_ref[...], pooled,
                         preferred_element_type=jnp.float32) + b1_ref[...]   # (Cr, 1)
        hidden = jnp.maximum(hidden, 0.0)
        logits = jnp.dot(w2_ref[...], hidden,
                         preferred_element_type=jnp.float32) + b2_ref[...]   # (C, 1)
        scale_ref[...] = (jax.nn.sigmoid(logits) + 1.0)[None, :, :]          # (1, C, 1)


def _se_apply_kernel(x_ref, scale_ref, o_ref):
    """out = x * scale (scale already includes the +1 residual fold)."""
    s = scale_ref[...].astype(x_ref.dtype)                                   # (1, C, 1)
    o_ref[...] = (x_ref[...] * s).astype(o_ref.dtype)


# ----------------------------------------------------------------------------
# Hardware-aware sizing
# ----------------------------------------------------------------------------
def _tpu_vmem_and_cores():
    """(per-TensorCore VMEM bytes, TensorCores per chip), generation-aware."""
    kind = ""
    try:
        kind = jax.devices()[0].device_kind.lower()
    except Exception:
        pass
    num_tc = 2 if "v7" in kind else 1

    vmem = None
    try:
        vmem = int(pltpu.get_tpu_info().vmem_capacity_bytes)
    except Exception:
        vmem = None
    if vmem is None or vmem <= 0:
        if "v7" in kind:
            vmem = 64 * 1024 * 1024
        elif kind:
            vmem = 128 * 1024 * 1024      # v5e / v6e: 128 MiB per TC
        else:
            vmem = 64 * 1024 * 1024       # unknown backend: be conservative
    # Guard against a per-chip figure on 2-TC parts (v7x is 64 MiB per TC).
    if num_tc >= 2:
        vmem = min(vmem, 64 * 1024 * 1024)
    return vmem, num_tc


def _choose_batch_tile(B, per_elem_bytes, budget_bytes, num_tc):
    """Largest batch tile whose in+out double-buffered blocks fit the budget.
    Returns None if even a single batch element does not fit."""
    max_bt = budget_bytes // (4 * per_elem_bytes)   # x in + out, each 2-buffered
    if max_bt < 1:
        return None
    divisors = [d for d in range(1, B + 1) if B % d == 0]
    fitting = [d for d in divisors if d <= max_bt]
    bt = max(fitting)
    if num_tc >= 2:
        # Prefer an even number of grid steps so both TensorCores get balanced
        # work, but only while each step still moves >= ~1 MiB (keeps the
        # ~0.35us per-step overhead small at v7x's 3.2 TB/s).
        even = [d for d in fitting
                if (B // d) % 2 == 0 and d * per_elem_bytes >= (1 << 20)]
        if even:
            bt = max(even)
    return bt


# ----------------------------------------------------------------------------
# pallas_call wrappers
# ----------------------------------------------------------------------------
def _se_block_batched(x_flat, w1t, b1_row, w2t, b2_row, *, bt, vmem_cap):
    B, C, HW = x_flat.shape
    Cr = w1t.shape[1]
    itemsize = x_flat.dtype.itemsize
    kernel = functools.partial(_se_fused_kernel, inv_hw=1.0 / HW)
    cost = pl.CostEstimate(
        flops=int(3 * B * C * HW + 4 * B * C * Cr),
        transcendentals=int(B * C),
        bytes_accessed=int(2 * B * C * HW * itemsize + (2 * C * Cr + Cr + C) * 4),
    )
    return pl.pallas_call(
        kernel,
        out_shape=jax.ShapeDtypeStruct(x_flat.shape, x_flat.dtype),
        grid_spec=pltpu.PrefetchScalarGridSpec(
            num_scalar_prefetch=0,
            grid=(B // bt,),
            in_specs=[
                pl.BlockSpec((bt, C, HW), lambda b: (b, 0, 0)),   # x
                pl.BlockSpec((C, Cr), lambda b: (0, 0)),          # w1^T
                pl.BlockSpec((1, Cr), lambda b: (0, 0)),          # b1
                pl.BlockSpec((Cr, C), lambda b: (0, 0)),          # w2^T
                pl.BlockSpec((1, C), lambda b: (0, 0)),           # b2
            ],
            out_specs=pl.BlockSpec((bt, C, HW), lambda b: (b, 0, 0)),
        ),
        compiler_params=pltpu.CompilerParams(
            dimension_semantics=("parallel",),
            vmem_limit_bytes=int(vmem_cap * 0.85),
        ),
        cost_estimate=cost,
    )(x_flat, w1t, b1_row, w2t, b2_row)


def _se_block_hw_tiled(x_flat, w1m, b1_col, w2m, b2_col, *, budget_bytes, vmem_cap):
    """Fallback when one batch element exceeds the VMEM budget: split over HW."""
    B, C, HW = x_flat.shape
    Cr = w1m.shape[0]
    itemsize = x_flat.dtype.itemsize

    # HW chunk: multiple of 128 (lane tiling), divides HW, fits the budget
    # (~4 resident chunk copies in pass 2: in + out, each double-buffered).
    max_thw = budget_bytes // (4 * C * itemsize)
    thw = 0
    for cand in range(128, HW + 1, 128):
        if HW % cand == 0 and cand <= max_thw:
            thw = cand
    if thw == 0:
        raise ValueError(
            "SEBlock Pallas kernel: a single (C, HW-chunk) tile does not fit "
            f"in the VMEM budget (C={C}, HW={HW}, itemsize={itemsize}, "
            f"budget={budget_bytes}B), or HW has no 128-aligned divisor.")
    n_hw = HW // thw
    vmem_limit = int(vmem_cap * 0.85)

    # Pass 1: squeeze (accumulated across HW chunks) + excite -> scale (B, C, 1).
    scale = pl.pallas_call(
        functools.partial(_se_pool_excite_kernel, inv_hw=1.0 / HW),
        out_shape=jax.ShapeDtypeStruct((B, C, 1), jnp.float32),
        grid_spec=pltpu.PrefetchScalarGridSpec(
            num_scalar_prefetch=0,
            grid=(B, n_hw),                                   # reduction axis last
            in_specs=[
                pl.BlockSpec((1, C, thw), lambda b, h: (b, 0, h)),   # x chunk
                pl.BlockSpec((Cr, C), lambda b, h: (0, 0)),          # w1
                pl.BlockSpec((Cr, 1), lambda b, h: (0, 0)),          # b1
                pl.BlockSpec((C, Cr), lambda b, h: (0, 0)),          # w2
                pl.BlockSpec((C, 1), lambda b, h: (0, 0)),           # b2
            ],
            out_specs=pl.BlockSpec((1, C, 1), lambda b, h: (b, 0, 0)),
            scratch_shapes=[pltpu.VMEM((C, 1), jnp.float32)],
        ),
        compiler_params=pltpu.CompilerParams(
            dimension_semantics=("parallel", "arbitrary"),
            vmem_limit_bytes=vmem_limit,
        ),
    )(x_flat, w1m, b1_col, w2m, b2_col)

    # Pass 2: out = x * scale (residual already folded into scale).
    return pl.pallas_call(
        _se_apply_kernel,
        out_shape=jax.ShapeDtypeStruct(x_flat.shape, x_flat.dtype),
        grid_spec=pltpu.PrefetchScalarGridSpec(
            num_scalar_prefetch=0,
            grid=(B, n_hw),
            in_specs=[
                pl.BlockSpec((1, C, thw), lambda b, h: (b, 0, h)),
                pl.BlockSpec((1, C, 1), lambda b, h: (b, 0, 0)),
            ],
            out_specs=pl.BlockSpec((1, C, thw), lambda b, h: (b, 0, h)),
        ),
        compiler_params=pltpu.CompilerParams(
            dimension_semantics=("parallel", "parallel"),
            vmem_limit_bytes=vmem_limit,
        ),
    )(x_flat, scale)


def se_block(x, w1, b1, w2, b2, *, vmem_budget_bytes=None):
    """SEBlock forward: out = x * sigmoid(W2 relu(W1 avgpool(x) + b1) + b2) + x.

    x: (B, C, H, W); w1: (Cr, C, 1, 1); b1: (Cr,); w2: (C, Cr, 1, 1); b2: (C,)
    `vmem_budget_bytes` overrides the auto-derived tiling budget (for testing).
    """
    B, C, H, W = x.shape
    Cr = w1.shape[0]
    HW = H * W
    itemsize = x.dtype.itemsize

    vmem_cap, num_tc = _tpu_vmem_and_cores()
    if vmem_budget_bytes is None:
        vmem_budget_bytes = int(vmem_cap * 0.7)      # headroom for scratch/temps
    # Weights + biases, conservatively counted double-buffered (f32).
    weight_bytes = 2 * (2 * C * Cr + Cr + C) * 4
    budget = max(vmem_budget_bytes - weight_bytes, 0)
    per_elem_bytes = C * HW * itemsize

    # NCHW kept as-is (no wrapper-side transposes: the op is HBM-bound).
    x_flat = x.reshape(B, C, HW)

    bt = _choose_batch_tile(B, per_elem_bytes, budget, num_tc)
    if bt is not None:
        out_flat = _se_block_batched(
            x_flat,
            w1.reshape(Cr, C).T, b1.reshape(1, Cr),
            w2.reshape(C, Cr).T, b2.reshape(1, C),
            bt=bt, vmem_cap=vmem_cap)
    else:
        # One batch element exceeds the VMEM budget: HW-chunked two-pass path.
        out_flat = _se_block_hw_tiled(
            x_flat,
            w1.reshape(Cr, C), b1.reshape(Cr, 1),
            w2.reshape(C, Cr), b2.reshape(C, 1),
            budget_bytes=budget, vmem_cap=vmem_cap)
    return out_flat.reshape(B, C, H, W)


# ----------------------------------------------------------------------------
# Reference + test
# ----------------------------------------------------------------------------
def _reference(x, w1, b1, w2, b2):
    """Pure-JAX reference of the PyTorch forward."""
    B, C, H, W = x.shape
    Cr = w1.shape[0]
    pooled = jnp.mean(x, axis=(2, 3))                              # (B, C)
    h = jnp.maximum(pooled @ w1.reshape(Cr, C).T + b1, 0.0)        # (B, Cr)
    s = jax.nn.sigmoid(h @ w2.reshape(C, Cr).T + b2)               # (B, C)
    return x * s[:, :, None, None] + x


if __name__ == "__main__":
    B, C, H, W = 2, 4, 16, 16
    reduction = 4
    Cr = C // reduction

    key = jax.random.PRNGKey(0)
    k_x, k_w1, k_b1, k_w2, k_b2 = jax.random.split(key, 5)

    x = jax.random.normal(k_x, (B, C, H, W), dtype=jnp.float32)
    # Deterministic synthetic params matching nn.Conv2d(C, Cr, 1) / nn.Conv2d(Cr, C, 1)
    w1 = jax.random.normal(k_w1, (Cr, C, 1, 1), dtype=jnp.float32) * 0.5
    b1 = jax.random.normal(k_b1, (Cr,), dtype=jnp.float32) * 0.1
    w2 = jax.random.normal(k_w2, (C, Cr, 1, 1), dtype=jnp.float32) * 0.5
    b2 = jax.random.normal(k_b2, (C,), dtype=jnp.float32) * 0.1

    ref = _reference(x, w1, b1, w2, b2)

    # Main (batched, single-pass) path.
    out = jax.block_until_ready(se_block(x, w1, b1, w2, b2))
    assert out.shape == (B, C, H, W)
    assert jnp.allclose(out, ref, atol=1e-5, rtol=1e-5), "batched path mismatch"

    # Force the HW-tiled fallback path (used when one batch element would not
    # fit the VMEM budget, e.g. large-HW layers on v7x) and check it too.
    out_hw = jax.block_until_ready(
        se_block(x, w1, b1, w2, b2, vmem_budget_bytes=12 * 1024))
    assert jnp.allclose(out_hw, ref, atol=1e-5, rtol=1e-5), "hw-tiled path mismatch"

    print("KERNEL_OK")
</pallas_src>

<mosaic_0001>
module attributes {stable_mosaic.version = 11 : i64} {
  func.func @_se_fused_kernel(%arg0: i32, %arg1: memref<2x4x256xf32, #tpu.memory_space<vmem>>, %arg2: memref<4x1xf32, #tpu.memory_space<vmem>>, %arg3: memref<1x1xf32, #tpu.memory_space<vmem>>, %arg4: memref<1x4xf32, #tpu.memory_space<vmem>>, %arg5: memref<1x4xf32, #tpu.memory_space<vmem>>, %arg6: memref<2x4x256xf32, #tpu.memory_space<vmem>>) attributes {dimension_semantics = [#tpu.dimension_semantics<parallel>], iteration_bounds = array<i64: 1>, scalar_prefetch = 0 : i64, scratch_operands = 0 : i64, tpu.core_type = #tpu.core_type<tc>, window_params = [{transform_indices = @transform_0, window_bounds = array<i64: 2, 4, 256>}, {pipeline_mode = #tpu.pipeline_mode<synchronous>, transform_indices = @transform_1, window_bounds = array<i64: 4, 1>}, {pipeline_mode = #tpu.pipeline_mode<synchronous>, transform_indices = @transform_2, window_bounds = array<i64: 1, 1>}, {pipeline_mode = #tpu.pipeline_mode<synchronous>, transform_indices = @transform_3, window_bounds = array<i64: 1, 4>}, {pipeline_mode = #tpu.pipeline_mode<synchronous>, transform_indices = @transform_4, window_bounds = array<i64: 1, 4>}, {transform_indices = @transform_5, window_bounds = array<i64: 2, 4, 256>}]} {
    %c0 = arith.constant 0 : index
    %c0_0 = arith.constant 0 : index
    %c0_1 = arith.constant 0 : index
    %0 = vector.load %arg1[%c0, %c0_0, %c0_1] : memref<2x4x256xf32, #tpu.memory_space<vmem>>, vector<2x4x256xf32>
    %cst = arith.constant dense<0.000000e+00> : vector<2x4xf32>
    %1 = vector.multi_reduction <add>, %0, %cst [2] : vector<2x4x256xf32> to vector<2x4xf32>
    %cst_2 = arith.constant 3.906250e-03 : f32
    %2 = vector.broadcast %cst_2 : f32 to vector<2x4xf32>
    %3 = arith.mulf %1, %2 : vector<2x4xf32>
    %c0_3 = arith.constant 0 : index
    %c0_4 = arith.constant 0 : index
    %4 = vector.load %arg2[%c0_3, %c0_4] : memref<4x1xf32, #tpu.memory_space<vmem>>, vector<4x1xf32>
    %cst_5 = arith.constant dense<0.000000e+00> : vector<2x1xf32>
    %5 = tpu.matmul %3, %4, %cst_5 {dimension_numbers = #tpu.dot_dimension_numbers<[1], [0], [0], [1], [0, 0, 1, 1], [], []>} : vector<2x4xf32>, vector<4x1xf32>, vector<2x1xf32> -> vector<2x1xf32>
    %c0_6 = arith.constant 0 : index
    %c0_7 = arith.constant 0 : index
    %6 = vector.load %arg3[%c0_6, %c0_7] : memref<1x1xf32, #tpu.memory_space<vmem>>, vector<1x1xf32>
    %7 = vector.broadcast %6 : vector<1x1xf32> to vector<2x1xf32>
    %8 = arith.addf %5, %7 : vector<2x1xf32>
    %cst_8 = arith.constant 0.000000e+00 : f32
    %9 = vector.broadcast %cst_8 : f32 to vector<2x1xf32>
    %10 = arith.maximumf %8, %9 : vector<2x1xf32>
    %c0_9 = arith.constant 0 : index
    %c0_10 = arith.constant 0 : index
    %11 = vector.load %arg4[%c0_9, %c0_10] : memref<1x4xf32, #tpu.memory_space<vmem>>, vector<1x4xf32>
    %cst_11 = arith.constant dense<0.000000e+00> : vector<2x4xf32>
    %12 = tpu.matmul %10, %11, %cst_11 {dimension_numbers = #tpu.dot_dimension_numbers<[1], [0], [0], [1], [0, 0, 1, 1], [], []>} : vector<2x1xf32>, vector<1x4xf32>, vector<2x4xf32> -> vector<2x4xf32>
    %c0_12 = arith.constant 0 : index
    %c0_13 = arith.constant 0 : index
    %13 = vector.load %arg5[%c0_12, %c0_13] : memref<1x4xf32, #tpu.memory_space<vmem>>, vector<1x4xf32>
    %14 = vector.broadcast %13 : vector<1x4xf32> to vector<2x4xf32>
    %15 = arith.addf %12, %14 : vector<2x4xf32>
    %16 = arith.negf %15 : vector<2x4xf32>
    %17 = math.exp %16 : vector<2x4xf32>
    %cst_14 = arith.constant 1.000000e+00 : f32
    %18 = vector.broadcast %cst_14 : f32 to vector<2x4xf32>
    %19 = arith.addf %18, %17 : vector<2x4xf32>
    %20 = arith.divf %18, %19 : vector<2x4xf32>
    %cst_15 = arith.constant 1.000000e+00 : f32
    %21 = vector.broadcast %cst_15 : f32 to vector<2x4xf32>
    %22 = arith.addf %20, %21 : vector<2x4xf32>
    %c0_16 = arith.constant 0 : index
    %c0_17 = arith.constant 0 : index
    %c0_18 = arith.constant 0 : index
    %23 = vector.load %arg1[%c0_16, %c0_17, %c0_18] : memref<2x4x256xf32, #tpu.memory_space<vmem>>, vector<2x4x256xf32>
    %24 = vector.shape_cast %22 : vector<2x4xf32> to vector<2x4x1xf32>
    %25 = vector.broadcast %24 : vector<2x4x1xf32> to vector<2x4x256xf32>
    %26 = arith.mulf %23, %25 : vector<2x4x256xf32>
    %c0_19 = arith.constant 0 : index
    %c0_20 = arith.constant 0 : index
    %c0_21 = arith.constant 0 : index
    %27 = vector.load %arg6[%c0_19, %c0_20, %c0_21] : memref<2x4x256xf32, #tpu.memory_space<vmem>>, vector<2x4x256xf32>
    tpu.vector_store %arg6[%c0_19, %c0_20, %c0_21], %26 {strides = array<i32>} : memref<2x4x256xf32, #tpu.memory_space<vmem>>, vector<2x4x256xf32>,
    return
  }
  func.func @transform_0(%arg0: i32) -> (i32, i32, i32) {
    %c0_i32 = arith.constant 0 : i32
    %c0_i32_0 = arith.constant 0 : i32
    %c0_i32_1 = arith.constant 0 : i32
    return %arg0, %c0_i32, %c0_i32_0 : i32, i32, i32
  }
  func.func @transform_1(%arg0: i32) -> (i32, i32) {
    %c0_i32 = arith.constant 0 : i32
    %c0_i32_0 = arith.constant 0 : i32
    %c0_i32_1 = arith.constant 0 : i32
    return %c0_i32, %c0_i32_0 : i32, i32
  }
  func.func @transform_2(%arg0: i32) -> (i32, i32) {
    %c0_i32 = arith.constant 0 : i32
    %c0_i32_0 = arith.constant 0 : i32
    %c0_i32_1 = arith.constant 0 : i32
    return %c0_i32, %c0_i32_0 : i32, i32
  }
  func.func @transform_3(%arg0: i32) -> (i32, i32) {
    %c0_i32 = arith.constant 0 : i32
    %c0_i32_0 = arith.constant 0 : i32
    %c0_i32_1 = arith.constant 0 : i32
    return %c0_i32, %c0_i32_0 : i32, i32
  }
  func.func @transform_4(%arg0: i32) -> (i32, i32) {
    %c0_i32 = arith.constant 0 : i32
    %c0_i32_0 = arith.constant 0 : i32
    %c0_i32_1 = arith.constant 0 : i32
    return %c0_i32, %c0_i32_0 : i32, i32
  }
  func.func @transform_5(%arg0: i32) -> (i32, i32, i32) {
    %c0_i32 = arith.constant 0 : i32
    %c0_i32_0 = arith.constant 0 : i32
    %c0_i32_1 = arith.constant 0 : i32
    return %arg0, %c0_i32, %c0_i32_0 : i32, i32, i32
  }
}

</mosaic_0001>

<bundles_post_ra>
// kernel: tpu_custom_call.1
= control target key start
LH: loop header
LB: loop body
LE: loop exit
PB: predicated region body
PF: predicated region fallthrough
CT: control target
= control target key end

     0   :  { %s628_s0 = inlined_call_operand.hbm [shape: f32[2,4,256], index: 0, kind: input, shape index: {}]   ;;  %s629_s1 = inlined_call_operand.hbm [shape: f32[4,1], index: 1, kind: input, shape index: {}]   ;;  %s630_s2 = inlined_call_operand.<no memory space> [shape: f32[1,1], index: 2, kind: input, shape index: {}]   ;;  %s631_s3 = inlined_call_operand.hbm [shape: f32[1,4], index: 3, kind: input, shape index: {}]   ;;  %s632_s4 = inlined_call_operand.hbm [shape: f32[1,4], index: 4, kind: input, shape index: {}]   ;;  %s633_s5 = inlined_call_operand.hbm [shape: f32[2,4,256], index: 5, kind: output, shape index: {}]  }
   0x1   :  { %v10_v0 = vstv %s630_s2 }
   0x2   :  { %11 = vst [vmem:[#allocation2] sm:$0x1] %v10_v0 }
   0x3   :  { %12 = vsyncpa [#allocation4], 0 }
   0x4   :  { %13 = vsyncpa [#allocation7], 0 }
   0x5   :  { %14 = vsyncpa [#allocation10], 0 }
   0x6   :  { %15 = vsyncpa [#allocation5], 0  ;;  %s495_s20 = smov [#allocation6]   ;;  %s496_s22 = smov [#allocation3]  }
   0x7   :  { %s34_s21 = sshll.u32 %s495_s20, 4  ;;  %s21_s23 = sshll.u32 %s496_s22, 4  ;;  %s35_s21 = int_to_ptr.vmem [resolvable:$true] %s34_s21  ;;  %s538_s23 = int_to_ptr.vmem [resolvable:$true] %s21_s23 }
   0x8   :  { %s377_s26 = scalar_lea.hbm %s629_s1, 64 }
   0x9   :  { %p378_p0 = scmp.ne.s32.totalorder %s629_s1, %s377_s26  ;;  %p381_p1 = scmp.lt.u32.totalorder %s377_s26, %s629_s1 }
   0xb   :  { %p383_p2 = pnand %p381_p1, %p378_p0 }
   0xd   :  { %386 = shalt.err (!%p383_p2)
}
   0xe   :  { %s387_s30 = scalar_lea.vmem %s35_s21, 64  ;;  %p392_p4 = scmp.lt.s32.totalorder %s35_s21, %s35_s21 }
   0xf   :  { %p388_p3 = scmp.ne.s32.totalorder %s35_s21, %s387_s30  ;;  %p393_p5 = scmp.lt.s32.totalorder %s387_s30, %s387_s30 }
  0x11   :  { %p394_p6 = por %p393_p5, %p392_p4 }
  0x13   :  { %p395_p7 = pnand %p394_p6, %p388_p3 }
  0x15   :  { %398 = shalt.err (!%p395_p7)
}
  0x16   :  { %37 = dma.hbm_to_vmem [thread:$0]  %s629_s1, 64, %s35_s21, [#allocation7]  }
  0x17   :  { %s399_s10 = scalar_lea.hbm %s628_s0, 256 }
  0x18   :  { %p400_p8 = scmp.ne.s32.totalorder %s628_s0, %s399_s10  ;;  %p403_p9 = scmp.lt.u32.totalorder %s399_s10, %s628_s0 }
  0x1a   :  { %p405_p10 = pnand %p403_p9, %p400_p8 }
  0x1c   :  { %408 = shalt.err (!%p405_p10)
}
  0x1d   :  { %s409_s15 = scalar_lea.vmem %s538_s23, 256  ;;  %p414_p12 = scmp.lt.s32.totalorder %s538_s23, %s538_s23 }
  0x1e   :  { %p410_p11 = scmp.ne.s32.totalorder %s538_s23, %s409_s15  ;;  %p415_p13 = scmp.lt.s32.totalorder %s409_s15, %s409_s15 }
  0x20   :  { %p416_p0 = por %p415_p13, %p414_p12 }
  0x22   :  { %p417_p1 = pnand %p416_p0, %p410_p11 }
  0x24   :  { %420 = shalt.err (!%p417_p1)
}
  0x25   :  { %s497_s1 = smov 128   ;;  %s498_s16 = smov 8  }
  0x26   :  { %27 = dma.hbm_to_vmem [thread:$0]  %s628_s0, 256, %s538_s23, [#allocation4], %s497_s1, %s497_s1, %s498_s16  }
  0x27   :  { %s499_s19 = smov [#allocation8]   ;;  %s500_s21 = smov [#allocation9]  }
  0x28   :  { %s46_s20 = sshll.u32 %s499_s19, 4  ;;  %s56_s22 = sshll.u32 %s500_s21, 4  ;;  %s47_s20 = int_to_ptr.vmem [resolvable:$true] %s46_s20  ;;  %s57_s22 = int_to_ptr.vmem [resolvable:$true] %s56_s22 }
  0x29   :  { %s421_s26 = scalar_lea.hbm %s631_s3, 16 }
  0x2a   :  { %p422_p2 = scmp.ne.s32.totalorder %s631_s3, %s421_s26  ;;  %p425_p3 = scmp.lt.u32.totalorder %s421_s26, %s631_s3 }
  0x2c   :  { %p427_p4 = pnand %p425_p3, %p422_p2 }
  0x2e   :  { %430 = shalt.err (!%p427_p4)
}
  0x2f   :  { %s431_s0 = scalar_lea.vmem %s47_s20, 16  ;;  %s435_s23 = scalar_lea.vmem %s47_s20, 32 }
  0x30   :  { %p432_p5 = scmp.ne.s32.totalorder %s47_s20, %s431_s0  ;;  %p436_p6 = scmp.lt.s32.totalorder %s47_s20, %s47_s20 }
  0x31   :  { %p437_p7 = scmp.lt.s32.totalorder %s435_s23, %s431_s0 }
  0x33   :  { %p438_p8 = por %p437_p7, %p436_p6 }
  0x35   :  { %p439_p9 = pnand %p438_p8, %p432_p5 }
  0x37   :  { %442 = shalt.err (!%p439_p9)
}
  0x38   :  { %49 = dma.hbm_to_vmem [thread:$0]  %s631_s3, 16, %s47_s20, [#allocation7]  }
  0x39   :  { %s443_s9 = scalar_lea.hbm %s632_s4, 16 }
  0x3a   :  { %p444_p10 = scmp.ne.s32.totalorder %s632_s4, %s443_s9  ;;  %p447_p11 = scmp.lt.u32.totalorder %s443_s9, %s632_s4 }
  0x3c   :  { %p449_p12 = pnand %p447_p11, %p444_p10 }
  0x3e   :  { %452 = shalt.err (!%p449_p12)
}
  0x3f   :  { %s453_s14 = scalar_lea.vmem %s57_s22, 16  ;;  %s457_s15 = scalar_lea.vmem %s57_s22, 32 }
  0x40   :  { %p454_p13 = scmp.ne.s32.totalorder %s57_s22, %s453_s14  ;;  %p458_p0 = scmp.lt.s32.totalorder %s57_s22, %s57_s22 }
  0x41   :  { %p459_p1 = scmp.lt.s32.totalorder %s457_s15, %s453_s14 }
  0x43   :  { %p460_p2 = por %p459_p1, %p458_p0 }
  0x45   :  { %p461_p3 = pnand %p460_p2, %p454_p13 }
  0x47   :  { %464 = shalt.err (!%p461_p3)
}
  0x48   :  { %59 = dma.hbm_to_vmem [thread:$0]  %s632_s4, 16, %s57_s22, [#allocation10]  }
  0x49   :  { %487 = dma.done.wait [#allocation4], 256  }
  0x4a   :  { %488 = vsyncadd [#allocation4], 4294967040 }
  0x4b   :  { %489 = dma.done.wait [#allocation7], 80  }
  0x4c   :  { %490 = vsyncadd [#allocation7], 4294967216 }
  0x4d   :  { %491 = dma.done.wait [#allocation10], 16  }
  0x4e   :  { %492 = vsyncadd [#allocation10], 4294967280  ;;  %vm80_vm0 = vcmask 1043456   ;;  %v596_v1 = vld [vmem:[#allocation3] sm:$0xff]  ;;  %v598_v2 = vld [vmem:[#allocation3 + $0x8] sm:$0xff]  ;;  %v501_v12 = vmov 0.0   ;;  %v103_v13 = vlaneseq }
  0x4f   :  { %v76_v3 = vcombine.high %v596_v1, %v596_v1  ;;  %v81_v4 = vsel %vm80_vm0, %v596_v1, 0.0  ;;  %v77_v5 = vcombine.high %v598_v2, %v598_v2  ;;  %v86_v7 = vsel %vm80_vm0, %v598_v2, 0.0  ;;  %v93_v11 = vld [vmem:[#allocation6] sm:$0xf]  ;;  %351 = vmatprep.subr.mxu0 %v501_v12  ;;  %356 = vmatprep.subr.mxu1 %v501_v12  ;;  %v192_v24 = vld [vmem:[#allocation8] sm:$0x1] }
  0x50   :  { %vm502_vm1 = vmmov 0   ;;  %352 = vmatpush3.msk.msra.mxu0 %vm80_vm0, %v93_v11  ;;  %v104_v14 = vand.u32 127, %v103_v13  ;;  %v106_v15 = vshrl.u32 %v103_v13, 7  ;;  %vm113_vm2 = vcmask 1041409   ;;  %v340_v25 = vld [vmem:[#allocation2] ss:$0 sm:$0xff] }
  0x51   :  { %v82_v6 = vsel %vm80_vm0, %v76_v3, 0.0  ;;  %v87_v8 = vsel %vm80_vm0, %v77_v5, 0.0  ;;  %353 = vmatprep.mubr.msk.f32.mxu0 %vm502_vm1, %v501_v12  ;;  %358 = vmatprep.mubr.msk.f32.mxu1 %vm502_vm1, %v501_v12  ;;  %vm115_vm3 = vcmask 31744   ;;  %vm204_vm4 = vcmask 1040384   ;;  %v343_v30 = vld [vmem:[#allocation9] ss:$0 sm:$0xff] }
  0x52   :  { %v83_v9 = vadd.f32 %v82_v6, %v81_v4  ;;  %v88_v10 = vadd.f32 %v87_v8, %v86_v7  ;;  %v107_v17 = vsub.s32 %v104_v14, %v106_v15  ;;  %357 = vmatpush3.msk.msra.mxu1 %vm204_vm4, %v192_v24  ;;  %vm200_vm5 = vcmask 7168   ;;  %s504_s4 = smov [#allocation11]  }
  0x53   :  { %v287_v37 = vsub.s32 0, %v106_v15  ;;  %v294_v41 = vsub.s32 1, %v106_v15  ;;  %v503_v43 = vmov 839922192   ;;  %s326_s18 = sshll.u32 %s504_s4, 4  ;;  %s327_s18 = int_to_ptr.vmem [resolvable:$true] %s326_s18 }
  0x54   :  { %84 = vadd.xlane.f32.xlu0 %v83_v9  ;;  %v302_v44 = vunpack.c.l.s4 %v503_v43  ;;  %s465_s19 = scalar_lea.vmem %s327_s18, 256  ;;  %p470_p5 = scmp.lt.s32.totalorder %s327_s18, %s327_s18 }
  0x55   :  { %p466_p4 = scmp.ne.s32.totalorder %s327_s18, %s465_s19  ;;  %p471_p6 = scmp.lt.s32.totalorder %s465_s19, %s465_s19 }
  0x56   :  { %v303_v45 = vunpack.c.0.s8 %v302_v44 }
  0x57   :  { %p472_p7 = por %p471_p6, %p470_p5 }
  0x58   :  { %89 = vadd.xlane.f32.xlu0 %v88_v10  ;;  %v306_v46 = vsub.s32 %v303_v45, %v106_v15 }
  0x59   :  { %p473_p8 = pnand %p472_p7, %p466_p4 }
  0xe1   :  { %v85_v16 = vpop.xlane.xlu0 %84 }
  0xe2   :  { %v91_v18 = vmul.f32 0.00390625, %v85_v16 }
  0xe4   :  { %v108_v21 = vrot.slane %v91_v18, %v107_v17 }
  0xe5   :  { %v90_v19 = vpop.xlane.xlu0 %89 }
  0xe6   :  { %v92_v20 = vmul.f32 0.00390625, %v90_v19 }
  0xe8   :  { %v112_v22 = vrot.slane %v92_v20, %v107_v17 }
  0xea   :  { %v114_v23 = vsel %vm113_vm2, %v112_v22, %v108_v21 }
  0xeb   :  { %354 = vmatmul.mubr.msk.f32.vlgmr.msra.gmra.mrb[0].mxu0 %vm115_vm3, %v114_v23 }
 0x1be   :  { %v187_v26 = vpop.f32.mrb[0].mxu0 }
 0x1bf   :  { %v188_v27 = vadd.f32 %v340_v25, %v187_v26  ;;  %v355_v28 = vpop.f32.mrb[1].mxu0 }
 0x1c1   :  { %v191_v29 = vmax.f32 %v188_v27, 0.0 }
 0x1c3   :  { %359 = vmatmul.mubr.msk.f32.vlgmr.msra.gmra.mrb[0].mxu1 %vm200_vm5, %v191_v29 }
 0x296   :  { %v274_v31 = vpop.f32.mrb[0].mxu1 }
 0x297   :  { %v275_v32 = vadd.f32 %v343_v30, %v274_v31  ;;  %v360_v33 = vpop.f32.mrb[1].mxu1 }
 0x299   :  { %v346_v34 = vmul.f32 -1.442695, %v275_v32 }
 0x29b   :  { %373 = vpow2.f32 %v346_v34 }
 0x2a5   :  { %v374_v35 = vpop.eup %373 }
 0x2a6   :  { %v281_v36 = vadd.f32 1.0, %v374_v35 }
 0x2a8   :  { %375 = vrcp.f32 %v281_v36 }
 0x2b2   :  { %v376_v38 = vpop.eup %375 }
 0x2b3   :  { %v284_v39 = vadd.f32 1.0, %v376_v38 }
 0x2b5   :  { %v288_v40 = vrot.slane %v284_v39, %v287_v37  ;;  %v295_v42 = vrot.slane %v284_v39, %v294_v41 }
 0x2b7   :  { %290 = vbcast.lane.b32.xlu1 %v288_v40, 256 }
 0x2bb   :  { %297 = vbcast.lane.b32.xlu1 %v295_v42, 256 }
 0x329   :  { %v291_v47 = vpop.permute.xlu1 %290 }
 0x32a   :  { %v307_v48 = vrot.slane %v291_v47, %v306_v46 }
 0x32c   :  { %v317_v49 = vmul.f32 %v307_v48, %v596_v1 }
 0x32d   :  { %v298_v50 = vpop.permute.xlu1 %297 }
 0x32e   :  { %319 = vst [vmem:[#allocation11] sm:$0xff] %v317_v49  ;;  %v314_v51 = vrot.slane %v298_v50, %v306_v46 }
 0x330   :  { %v318_v52 = vmul.f32 %v314_v51, %v598_v2 }
 0x332   :  { %320 = vst [vmem:[#allocation11 + $0x8] sm:$0xff] %v318_v52 }
 0x333   :  { %476 = shalt.err (!%p473_p8)
}
 0x334   :  { %s477_s22 = scalar_lea.hbm %s633_s5, 256 }
 0x335   :  { %p478_p9 = scmp.ne.s32.totalorder %s633_s5, %s477_s22  ;;  %p481_p10 = scmp.lt.u32.totalorder %s477_s22, %s633_s5 }
 0x337   :  { %p483_p11 = pnand %p481_p10, %p478_p9 }
 0x339   :  { %486 = shalt.err (!%p483_p11)
}
 0x33a   :  { %332 = dma.vmem_to_hbm [thread:$0]  %s327_s18, 256, %s633_s5, [#allocation5], %s497_s1, %s497_s1, %s498_s16  }
 0x33b   :  { %493 = dma.done.wait [#allocation5], 256  }
 0x33c   :  { %494 = vsyncadd [#allocation5], 4294967040 }
 0x33d   :  { %336 = vsyncpa [#allocation4], 1 }
 0x33e   :  { %337 = vsyncpa [#allocation7], 1 }
 0x33f   :  { %338 = vsyncpa [#allocation10], 1 }
 0x340   :  { %339 = vsyncpa [#allocation5], 1 }

</bundles_post_ra>
